<compile_context>
chip_gen: v5e
topology: v5e:2x2
jax: 0.10.0
libtpu: 0.0.40
codegen_flags: <defaults>
</compile_context>

<pallas_src>
import functools

import jax
import jax.numpy as jnp
from jax.experimental import pallas as pl
from jax.experimental.pallas import tpu as pltpu


def _round_up(a: int, m: int) -> int:
    return (a + m - 1) // m * m


def mlp_layer_kernel(x_ref, w_ref, b_ref, gamma_ref, beta_ref, o_ref, acc_ref,
                     *, n_valid: int, eps: float):
    """One (TM, N_pad) output tile of SiLU(LayerNorm(x @ W + b)).

    Grid = (M tiles, K tiles). Partial products accumulate into acc_ref over
    the K axis; the LayerNorm/SiLU epilogue runs only on the last K step.
    """
    k = pl.program_id(1)

    @pl.when(k == 0)
    def _():
        acc_ref[...] = jnp.zeros_like(acc_ref)

    # MXU matmul: native-dtype operands, f32 accumulation.
    acc_ref[...] += jnp.dot(x_ref[...], w_ref[...],
                            preferred_element_type=jnp.float32)

    @pl.when(k == pl.num_programs(1) - 1)
    def _():
        y = acc_ref[...] + b_ref[...].astype(jnp.float32)           # (TM, N_pad)

        # Padded feature columns (index >= n_valid) must not affect LN stats.
        mask = jax.lax.broadcasted_iota(jnp.int32, y.shape, 1) < n_valid
        inv_n = jnp.float32(1.0 / n_valid)

        ym = jnp.where(mask, y, 0.0)
        mean = jnp.sum(ym, axis=-1, keepdims=True) * inv_n
        centered = jnp.where(mask, y - mean, 0.0)
        var = jnp.sum(centered * centered, axis=-1, keepdims=True) * inv_n
        inv_std = jax.lax.rsqrt(var + eps)

        yn = (centered * inv_std * gamma_ref[...].astype(jnp.float32)
              + beta_ref[...].astype(jnp.float32))
        out = yn * jax.nn.sigmoid(yn)                                 # SiLU
        o_ref[...] = out.astype(o_ref.dtype)


def mlp_layer(x, w, b, gamma, beta, *, eps: float = 1e-5):
    """x: (M, K); w: (K, N); b/gamma/beta: (N,). Returns SiLU(LN(x @ w + b))."""
    M, K = x.shape
    N = w.shape[1]

    # Lane-dense padding of feature dims to multiples of 128.
    K_pad = _round_up(K, 128)
    N_pad = _round_up(N, 128)

    # Contraction tile (multiple of 128, capped at 512).
    tk = min(512, K_pad)

    # Row tile: largest TM (multiple of 8, <= 512) whose working set fits a
    # ~24 MiB budget:
    #   2x (TM,TK) x-tiles + 2x (TK,N_pad) W-tiles + 2x (TM,N_pad) out-tiles
    #   + (TM,N_pad) f32 accumulator  (bias/gamma/beta are negligible).
    budget = 24 * 1024 * 1024
    in_bytes = jnp.dtype(x.dtype).itemsize
    w_bytes = jnp.dtype(w.dtype).itemsize
    fixed = 2 * tk * N_pad * w_bytes
    per_row = 2 * tk * in_bytes + 2 * N_pad * in_bytes + N_pad * 4
    tm = max(8, min(512, (budget - fixed) // per_row))
    tm = (tm // 8) * 8
    tm = min(tm, _round_up(M, 8))
    M_pad = _round_up(M, tm)

    # Zero padding: padded K rows/cols contribute 0 to the dot; gamma/beta pad
    # to 0 so padded output columns are exactly 0 and get sliced off below.
    xp = jnp.pad(x, ((0, M_pad - M), (0, K_pad - K)))
    wp = jnp.pad(w, ((0, K_pad - K), (0, N_pad - N)))
    bp = jnp.pad(b, (0, N_pad - N)).reshape(1, N_pad)
    gp = jnp.pad(gamma, (0, N_pad - N)).reshape(1, N_pad)
    betap = jnp.pad(beta, (0, N_pad - N)).reshape(1, N_pad)

    grid = (M_pad // tm, K_pad // tk)
    kernel = functools.partial(mlp_layer_kernel, n_valid=N, eps=eps)

    out = pl.pallas_call(
        kernel,
        out_shape=jax.ShapeDtypeStruct((M_pad, N_pad), x.dtype),
        grid_spec=pltpu.PrefetchScalarGridSpec(
            num_scalar_prefetch=0,
            grid=grid,
            in_specs=[
                pl.BlockSpec((tm, tk), lambda i, k: (i, k)),      # x tile
                pl.BlockSpec((tk, N_pad), lambda i, k: (k, 0)),   # W (resident over i)
                pl.BlockSpec((1, N_pad), lambda i, k: (0, 0)),    # bias (resident)
                pl.BlockSpec((1, N_pad), lambda i, k: (0, 0)),    # gamma (resident)
                pl.BlockSpec((1, N_pad), lambda i, k: (0, 0)),    # beta (resident)
            ],
            out_specs=pl.BlockSpec((tm, N_pad), lambda i, k: (i, 0)),
            scratch_shapes=[pltpu.VMEM((tm, N_pad), jnp.float32)],
        ),
        compiler_params=pltpu.CompilerParams(
            dimension_semantics=("parallel", "arbitrary"),
            vmem_limit_bytes=32 * 1024 * 1024,
        ),
    )(xp, wp, bp, gp, betap)

    return out[:M, :N]


if __name__ == "__main__":
    # Small shapes consistent with MLPLayer(in_features=32, out_features=32),
    # rank_factor=0 (standard nn.Linear path).
    key = jax.random.PRNGKey(0)
    k_x, k_w, k_b = jax.random.split(key, 3)

    batch, in_features, out_features = 8, 32, 32

    x = jax.random.normal(k_x, (batch, in_features), dtype=jnp.float32)
    # nn.Linear stores weight as (out, in); kernel consumes (in, out).
    w_oi = jax.random.normal(k_w, (out_features, in_features), dtype=jnp.float32) * 0.1
    w = w_oi.T
    b = jax.random.normal(k_b, (out_features,), dtype=jnp.float32) * 0.01
    gamma = jnp.ones((out_features,), dtype=jnp.float32)   # LayerNorm weight init
    beta = jnp.zeros((out_features,), dtype=jnp.float32)   # LayerNorm bias init

    out = mlp_layer(x, w, b, gamma, beta)
    jax.block_until_ready(out)

    # Pure-JAX reference (PyTorch LayerNorm: biased variance, eps=1e-5).
    y_ref = x @ w + b
    mu = y_ref.mean(-1, keepdims=True)
    var = ((y_ref - mu) ** 2).mean(-1, keepdims=True)
    y_ref = (y_ref - mu) / jnp.sqrt(var + 1e-5) * gamma + beta
    y_ref = y_ref * jax.nn.sigmoid(y_ref)
    assert jnp.allclose(out, y_ref, atol=1e-5, rtol=1e-5), (
        float(jnp.max(jnp.abs(out - y_ref))))

    print("KERNEL_OK")
</pallas_src>

<mosaic_0001>
module attributes {stable_mosaic.version = 11 : i64} {
  func.func @mlp_layer_kernel(%arg0: i32, %arg1: i32, %arg2: memref<8x128xf32, #tpu.memory_space<vmem>>, %arg3: memref<128x128xf32, #tpu.memory_space<vmem>>, %arg4: memref<1x128xf32, #tpu.memory_space<vmem>>, %arg5: memref<1x128xf32, #tpu.memory_space<vmem>>, %arg6: memref<1x128xf32, #tpu.memory_space<vmem>>, %arg7: memref<8x128xf32, #tpu.memory_space<vmem>>, %arg8: memref<8x128xf32, #tpu.memory_space<vmem>>) attributes {dimension_semantics = [#tpu.dimension_semantics<parallel>, #tpu.dimension_semantics<arbitrary>], iteration_bounds = array<i64: 1, 1>, scalar_prefetch = 0 : i64, scratch_operands = 1 : i64, tpu.core_type = #tpu.core_type<tc>, window_params = [{transform_indices = @transform_0, window_bounds = array<i64: 8, 128>}, {transform_indices = @transform_1, window_bounds = array<i64: 128, 128>}, {pipeline_mode = #tpu.pipeline_mode<synchronous>, transform_indices = @transform_2, window_bounds = array<i64: 1, 128>}, {pipeline_mode = #tpu.pipeline_mode<synchronous>, transform_indices = @transform_3, window_bounds = array<i64: 1, 128>}, {pipeline_mode = #tpu.pipeline_mode<synchronous>, transform_indices = @transform_4, window_bounds = array<i64: 1, 128>}, {transform_indices = @transform_5, window_bounds = array<i64: 8, 128>}]} {
    %c0_i32 = arith.constant 0 : i32
    %0 = arith.cmpi eq, %arg1, %c0_i32 : i32
    %1 = arith.extui %0 : i1 to i32
    %c0_i32_0 = arith.constant 0 : i32
    %2 = arith.cmpi ne, %1, %c0_i32_0 : i32
    scf.if %2 {
      %cst_10 = arith.constant 0.000000e+00 : f32
      %12 = vector.broadcast %cst_10 : f32 to vector<8x128xf32>
      %c0_11 = arith.constant 0 : index
      %c0_12 = arith.constant 0 : index
      %13 = vector.load %arg8[%c0_11, %c0_12] : memref<8x128xf32, #tpu.memory_space<vmem>>, vector<8x128xf32>
      tpu.vector_store %arg8[%c0_11, %c0_12], %12 {strides = array<i32>} : memref<8x128xf32, #tpu.memory_space<vmem>>, vector<8x128xf32>,
    } else {
    }
    %c0 = arith.constant 0 : index
    %c0_1 = arith.constant 0 : index
    %3 = vector.load %arg8[%c0, %c0_1] : memref<8x128xf32, #tpu.memory_space<vmem>>, vector<8x128xf32>
    %c0_2 = arith.constant 0 : index
    %c0_3 = arith.constant 0 : index
    %4 = vector.load %arg2[%c0_2, %c0_3] : memref<8x128xf32, #tpu.memory_space<vmem>>, vector<8x128xf32>
    %c0_4 = arith.constant 0 : index
    %c0_5 = arith.constant 0 : index
    %5 = vector.load %arg3[%c0_4, %c0_5] : memref<128x128xf32, #tpu.memory_space<vmem>>, vector<128x128xf32>
    %cst = arith.constant dense<0.000000e+00> : vector<8x128xf32>
    %6 = tpu.matmul %4, %5, %cst {dimension_numbers = #tpu.dot_dimension_numbers<[1], [0], [0], [1], [0, 0, 1, 1], [], []>} : vector<8x128xf32>, vector<128x128xf32>, vector<8x128xf32> -> vector<8x128xf32>
    %7 = arith.addf %3, %6 : vector<8x128xf32>
    %c0_6 = arith.constant 0 : index
    %c0_7 = arith.constant 0 : index
    %8 = vector.load %arg8[%c0_6, %c0_7] : memref<8x128xf32, #tpu.memory_space<vmem>>, vector<8x128xf32>
    tpu.vector_store %arg8[%c0_6, %c0_7], %7 {strides = array<i32>} : memref<8x128xf32, #tpu.memory_space<vmem>>, vector<8x128xf32>,
    %c0_i32_8 = arith.constant 0 : i32
    %9 = arith.cmpi eq, %arg1, %c0_i32_8 : i32
    %10 = arith.extui %9 : i1 to i32
    %c0_i32_9 = arith.constant 0 : i32
    %11 = arith.cmpi ne, %10, %c0_i32_9 : i32
    scf.if %11 {
      %c0_10 = arith.constant 0 : index
      %c0_11 = arith.constant 0 : index
      %12 = vector.load %arg8[%c0_10, %c0_11] : memref<8x128xf32, #tpu.memory_space<vmem>>, vector<8x128xf32>
      %c0_12 = arith.constant 0 : index
      %c0_13 = arith.constant 0 : index
      %13 = vector.load %arg4[%c0_12, %c0_13] : memref<1x128xf32, #tpu.memory_space<vmem>>, vector<1x128xf32>
      %14 = vector.broadcast %13 : vector<1x128xf32> to vector<8x128xf32>
      %15 = arith.addf %12, %14 : vector<8x128xf32>
      %16 = tpu.iota {dimensions = array<i32: 1>} : vector<8x128xi32>
      %c32_i32 = arith.constant 32 : i32
      %17 = vector.broadcast %c32_i32 : i32 to vector<8x128xi32>
      %18 = arith.cmpi slt, %16, %17 : vector<8x128xi32>
      %cst_14 = arith.constant 0.000000e+00 : f32
      %19 = vector.broadcast %cst_14 : f32 to vector<8x128xf32>
      %20 = arith.select %18, %15, %19 : vector<8x128xi1>, vector<8x128xf32>
      %cst_15 = arith.constant dense<0.000000e+00> : vector<8xf32>
      %21 = vector.multi_reduction <add>, %20, %cst_15 [1] : vector<8x128xf32> to vector<8xf32>
      %22 = vector.shape_cast %21 : vector<8xf32> to vector<8x1xf32>
      %cst_16 = arith.constant 3.125000e-02 : f32
      %23 = vector.broadcast %cst_16 : f32 to vector<8x1xf32>
      %24 = arith.mulf %22, %23 : vector<8x1xf32>
      %25 = vector.broadcast %24 : vector<8x1xf32> to vector<8x128xf32>
      %26 = arith.subf %15, %25 : vector<8x128xf32>
      %cst_17 = arith.constant 0.000000e+00 : f32
      %27 = vector.broadcast %cst_17 : f32 to vector<8x128xf32>
      %28 = arith.select %18, %26, %27 : vector<8x128xi1>, vector<8x128xf32>
      %29 = arith.mulf %28, %28 : vector<8x128xf32>
      %cst_18 = arith.constant dense<0.000000e+00> : vector<8xf32>
      %30 = vector.multi_reduction <add>, %29, %cst_18 [1] : vector<8x128xf32> to vector<8xf32>
      %31 = vector.shape_cast %30 : vector<8xf32> to vector<8x1xf32>
      %cst_19 = arith.constant 3.125000e-02 : f32
      %32 = vector.broadcast %cst_19 : f32 to vector<8x1xf32>
      %33 = arith.mulf %31, %32 : vector<8x1xf32>
      %cst_20 = arith.constant 9.99999974E-6 : f32
      %34 = vector.broadcast %cst_20 : f32 to vector<8x1xf32>
      %35 = arith.addf %33, %34 : vector<8x1xf32>
      %36 = math.rsqrt %35 : vector<8x1xf32>
      %37 = vector.broadcast %36 : vector<8x1xf32> to vector<8x128xf32>
      %38 = arith.mulf %28, %37 : vector<8x128xf32>
      %c0_21 = arith.constant 0 : index
      %c0_22 = arith.constant 0 : index
      %39 = vector.load %arg5[%c0_21, %c0_22] : memref<1x128xf32, #tpu.memory_space<vmem>>, vector<1x128xf32>
      %40 = vector.broadcast %39 : vector<1x128xf32> to vector<8x128xf32>
      %41 = arith.mulf %38, %40 : vector<8x128xf32>
      %c0_23 = arith.constant 0 : index
      %c0_24 = arith.constant 0 : index
      %42 = vector.load %arg6[%c0_23, %c0_24] : memref<1x128xf32, #tpu.memory_space<vmem>>, vector<1x128xf32>
      %43 = vector.broadcast %42 : vector<1x128xf32> to vector<8x128xf32>
      %44 = arith.addf %41, %43 : vector<8x128xf32>
      %45 = arith.negf %44 : vector<8x128xf32>
      %46 = math.exp %45 : vector<8x128xf32>
      %cst_25 = arith.constant 1.000000e+00 : f32
      %47 = vector.broadcast %cst_25 : f32 to vector<8x128xf32>
      %48 = arith.addf %47, %46 : vector<8x128xf32>
      %49 = arith.divf %47, %48 : vector<8x128xf32>
      %50 = arith.mulf %44, %49 : vector<8x128xf32>
      %c0_26 = arith.constant 0 : index
      %c0_27 = arith.constant 0 : index
      %51 = vector.load %arg7[%c0_26, %c0_27] : memref<8x128xf32, #tpu.memory_space<vmem>>, vector<8x128xf32>
      tpu.vector_store %arg7[%c0_26, %c0_27], %50 {strides = array<i32>} : memref<8x128xf32, #tpu.memory_space<vmem>>, vector<8x128xf32>,
    } else {
    }
    return
  }
  func.func @transform_0(%arg0: i32, %arg1: i32) -> (i32, i32) {
    %c0_i32 = arith.constant 0 : i32
    return %arg0, %arg1 : i32, i32
  }
  func.func @transform_1(%arg0: i32, %arg1: i32) -> (i32, i32) {
    %c0_i32 = arith.constant 0 : i32
    %c0_i32_0 = arith.constant 0 : i32
    return %arg1, %c0_i32 : i32, i32
  }
  func.func @transform_2(%arg0: i32, %arg1: i32) -> (i32, i32) {
    %c0_i32 = arith.constant 0 : i32
    %c0_i32_0 = arith.constant 0 : i32
    %c0_i32_1 = arith.constant 0 : i32
    return %c0_i32, %c0_i32_0 : i32, i32
  }
  func.func @transform_3(%arg0: i32, %arg1: i32) -> (i32, i32) {
    %c0_i32 = arith.constant 0 : i32
    %c0_i32_0 = arith.constant 0 : i32
    %c0_i32_1 = arith.constant 0 : i32
    return %c0_i32, %c0_i32_0 : i32, i32
  }
  func.func @transform_4(%arg0: i32, %arg1: i32) -> (i32, i32) {
    %c0_i32 = arith.constant 0 : i32
    %c0_i32_0 = arith.constant 0 : i32
    %c0_i32_1 = arith.constant 0 : i32
    return %c0_i32, %c0_i32_0 : i32, i32
  }
  func.func @transform_5(%arg0: i32, %arg1: i32) -> (i32, i32) {
    %c0_i32 = arith.constant 0 : i32
    %c0_i32_0 = arith.constant 0 : i32
    return %arg0, %c0_i32 : i32, i32
  }
}

</mosaic_0001>

<bundles_post_ra>
// kernel: tpu_custom_call.1
= control target key start
LH: loop header
LB: loop body
LE: loop exit
PB: predicated region body
PF: predicated region fallthrough
CT: control target
= control target key end

     0   :  { %10 = vsyncpa [#allocation4], 0  ;;  %s325_s0 = inlined_call_operand.hbm [shape: f32[8,128], index: 0, kind: input, shape index: {}]   ;;  %s326_s1 = inlined_call_operand.hbm [shape: f32[128,128], index: 1, kind: input, shape index: {}]   ;;  %s327_s2 = inlined_call_operand.vmem [shape: f32[1,128], index: 2, kind: input, shape index: {}]   ;;  %s328_s3 = inlined_call_operand.vmem [shape: f32[1,128], index: 3, kind: input, shape index: {}]   ;;  %s329_s4 = inlined_call_operand.vmem [shape: f32[1,128], index: 4, kind: input, shape index: {}]   ;;  %s330_s5 = inlined_call_operand.hbm [shape: f32[8,128], index: 5, kind: output, shape index: {}]  }
   0x1   :  { %11 = vsyncpa [#allocation7], 0 }
   0x2   :  { %12 = vsyncpa [#allocation5], 0  ;;  %s18_s20 = sshll.u32 %s325_s0, 4  ;;  %s272_s21 = smov [#allocation3]   ;;  %s19_s20 = int_to_ptr.hbm [resolvable:$true] %s18_s20 }
   0x3   :  { %s20_s22 = sshll.u32 %s272_s21, 4  ;;  %s28_s25 = sshll.u32 %s326_s1, 4  ;;  %s21_s22 = int_to_ptr.vmem [resolvable:$true] %s20_s22  ;;  %s29_s25 = int_to_ptr.hbm [resolvable:$true] %s28_s25 }
   0x4   :  { %23 = dma.hbm_to_vmem [thread:$0]  %s19_s20, 128, %s21_s22, [#allocation4]  }
   0x5   :  { %s273_s26 = smov [#allocation6]   ;;  %s274_s28 = smov 128  }
   0x6   :  { %s30_s27 = sshll.u32 %s273_s26, 4  ;;  %s275_s29 = smov 8   ;;  %s31_s27 = int_to_ptr.vmem [resolvable:$true] %s30_s27 }
   0x7   :  { %36 = dma.hbm_to_vmem [thread:$0]  %s29_s25, 2048, %s31_s27, [#allocation7], %s274_s28, %s274_s28, %s275_s29  }
   0x8   :  { %266 = dma.done.wait [#allocation4], 128  }
   0x9   :  { %267 = vsyncadd [#allocation4], 4294967168 }
   0xa   :  { %268 = dma.done.wait [#allocation7], 2048  }
   0xb   :  { %269 = vsyncadd [#allocation7], 4294965248  ;;  %v73_v0 = vld [vmem:[#allocation6 + $0x78] sm:$0xff]  ;;  %v72_v1 = vld [vmem:[#allocation6 + $0x70] sm:$0xff]  ;;  %v105_v17 = vlaneseq  ;;  %s168_s10 = sshll.u32 %s330_s5, 4  ;;  %s169_s10 = int_to_ptr.hbm [resolvable:$true] %s168_s10 }
   0xc   :  { %74 = vmatpush.msra.mxu0 %v73_v0  ;;  %v71_v2 = vld [vmem:[#allocation6 + $0x68] sm:$0xff]  ;;  %v70_v3 = vld [vmem:[#allocation6 + $0x60] sm:$0xff]  ;;  %v69_v4 = vld [vmem:[#allocation6 + $0x58] sm:$0xff] }
   0xd   :  { %v68_v5 = vld [vmem:[#allocation6 + $0x50] sm:$0xff]  ;;  %v67_v6 = vld [vmem:[#allocation6 + $0x48] sm:$0xff]  ;;  %v66_v7 = vld [vmem:[#allocation6 + $0x40] sm:$0xff]  ;;  %v106_v18 = vand.u32 127, %v105_v17 }
   0xe   :  { %75 = vmatpush.msra.mxu0 %v72_v1  ;;  %v65_v8 = vld [vmem:[#allocation6 + $0x38] sm:$0xff]  ;;  %v64_v9 = vld [vmem:[#allocation6 + $0x30] sm:$0xff]  ;;  %v63_v10 = vld [vmem:[#allocation6 + $0x28] sm:$0xff] }
   0xf   :  { %v62_v11 = vld [vmem:[#allocation6 + $0x20] sm:$0xff]  ;;  %v61_v12 = vld [vmem:[#allocation6 + $0x18] sm:$0xff]  ;;  %v60_v13 = vld [vmem:[#allocation6 + $0x10] sm:$0xff]  ;;  %vm107_vm0 = vcmp.lt.s32.totalorder %v106_v18, 32 }
  0x10   :  { %76 = vmatpush.msra.mxu0 %v71_v2  ;;  %v59_v14 = vld [vmem:[#allocation6 + $0x8] sm:$0xff]  ;;  %v58_v15 = vld [vmem:[#allocation6] sm:$0xff]  ;;  %v57_v16 = vld [vmem:[#allocation3] sm:$0xff] }
  0x11   :  { %v185_v19 = vld [vmem:[%s327_s2] ss:$0 sm:$0xff] }
  0x12   :  { %77 = vmatpush.msra.mxu0 %v70_v3  ;;  %v186_v37 = vld [vmem:[%s328_s3] ss:$0 sm:$0xff]  ;;  %s276_s3 = smov [#allocation8]  }
  0x13   :  { %v187_v40 = vld [vmem:[%s329_s4] ss:$0 sm:$0xff]  ;;  %s166_s4 = sshll.u32 %s276_s3, 4  ;;  %s167_s4 = int_to_ptr.vmem [resolvable:$true] %s166_s4 }
  0x14   :  { %78 = vmatpush.msra.mxu0 %v69_v4 }
  0x16   :  { %79 = vmatpush.msra.mxu0 %v68_v5 }
  0x18   :  { %80 = vmatpush.msra.mxu0 %v67_v6 }
  0x1a   :  { %81 = vmatpush.msra.mxu0 %v66_v7 }
  0x1c   :  { %82 = vmatpush.msra.mxu0 %v65_v8 }
  0x1e   :  { %83 = vmatpush.msra.mxu0 %v64_v9 }
  0x20   :  { %84 = vmatpush.msra.mxu0 %v63_v10 }
  0x22   :  { %85 = vmatpush.msra.mxu0 %v62_v11 }
  0x24   :  { %86 = vmatpush.msra.mxu0 %v61_v12 }
  0x26   :  { %87 = vmatpush.msra.mxu0 %v60_v13 }
  0x28   :  { %88 = vmatpush.msra.mxu0 %v59_v14 }
  0x2a   :  { %89 = vmatpush.msra.mxu0 %v58_v15 }
  0x2b   :  { %90 = vmatmul.f32.vlgmr.msra.gmra.mxu0 %v57_v16 }
  0xa8   :  { %v91_v20 = vpop.f32.mrf.mxu0 }
  0xa9   :  { %v104_v21 = vadd.f32 %v185_v19, %v91_v20 }
  0xab   :  { %v108_v22 = vsel %vm107_vm0, %v104_v21, 0.0 }
  0xac   :  { %109 = vadd.xlane.f32.xlu0 %v108_v22 }
 0x11f   :  { %v110_v23 = vpop.xlane.xlu0 %109 }
 0x120   :  { %v111_v24 = vmul.f32 0.03125, %v110_v23 }
 0x122   :  { %v112_v25 = vsub.f32 %v104_v21, %v111_v24 }
 0x124   :  { %v113_v26 = vsel %vm107_vm0, %v112_v25, 0.0 }
 0x125   :  { %v114_v27 = vmul.f32 %v113_v26, %v113_v26 }
 0x127   :  { %115 = vadd.xlane.f32.xlu0 %v114_v27 }
 0x19a   :  { %v116_v28 = vpop.xlane.xlu0 %115 }
 0x19b   :  { %v117_v29 = vmul.f32 0.03125, %v116_v28 }
 0x19d   :  { %v118_v30 = vadd.f32 1e-05, %v117_v29 }
 0x19f   :  { %188 = vrsqrt.f32 %v118_v30  ;;  %vm125_vm2 = vweird.f32 %v118_v30 }
 0x1a5   :  { %v189_v31 = vpop.eup %188 }
 0x1a6   :  { %v120_v32 = vmul.f32 %v189_v31, %v118_v30  ;;  %vm126_vm1 = vweird.f32 %v189_v31 }
 0x1a7   :  { %vm127_vm3 = vmor %vm125_vm2, %vm126_vm1 }
 0x1a8   :  { %v121_v33 = vmul.f32 %v189_v31, %v120_v32 }
 0x1aa   :  { %v122_v34 = vmul.f32 0.5, %v121_v33 }
 0x1ac   :  { %v123_v35 = vsub.f32 1.5, %v122_v34 }
 0x1ae   :  { %v124_v36 = vmul.f32 %v189_v31, %v123_v35 }
 0x1b0   :  { %v128_v38 = vsel %vm127_vm3, %v189_v31, %v124_v36 }
 0x1b1   :  { %v129_v39 = vmul.f32 %v128_v38, %v113_v26 }
 0x1b3   :  { %v134_v41 = vmul.f32 %v186_v37, %v129_v39 }
 0x1b5   :  { %v139_v42 = vadd.f32 %v187_v40, %v134_v41 }
 0x1b7   :  { %v179_v43 = vmul.f32 -1.442695, %v139_v42 }
 0x1b9   :  { %190 = vpow2.f32 %v179_v43 }
 0x1bf   :  { %v191_v44 = vpop.eup %190 }
 0x1c0   :  { %v143_v45 = vadd.f32 1.0, %v191_v44 }
 0x1c2   :  { %192 = vrcp.f32 %v143_v45  ;;  %v155_v49 = vand.u32 2147483648, %v143_v45  ;;  %v153_v51 = vand.u32 2147483647, %v143_v45  ;;  %vm149_vm5 = vweird.f32 %v143_v45 }
 0x1c4   :  { %v156_v53 = vor.u32 1.1754944e-38, %v155_v49  ;;  %vm154_vm7 = vcmp.eq.f32.partialorder %v153_v51, 8.507059e+37 }
 0x1c8   :  { %v193_v46 = vpop.eup %192 }
 0x1c9   :  { %v145_v47 = vmul.f32 %v193_v46, %v143_v45  ;;  %vm150_vm4 = vweird.f32 %v193_v46 }
 0x1ca   :  { %vm151_vm6 = vmor %vm149_vm5, %vm150_vm4 }
 0x1cb   :  { %v146_v48 = vsub.f32 1.0, %v145_v47 }
 0x1cd   :  { %v147_v50 = vmul.f32 %v193_v46, %v146_v48 }
 0x1cf   :  { %v148_v52 = vadd.f32 %v193_v46, %v147_v50 }
 0x1d1   :  { %v152_v54 = vsel %vm151_vm6, %v193_v46, %v148_v52 }
 0x1d2   :  { %v157_v55 = vsel %vm154_vm7, %v156_v53, %v152_v54 }
 0x1d3   :  { %v159_v56 = vmul.f32 %v157_v55, %v139_v42 }
 0x1d5   :  { %160 = vst [vmem:[#allocation8] sm:$0xff] %v159_v56 }
 0x1d6   :  { %171 = dma.vmem_to_hbm [thread:$0]  %s167_s4, 128, %s169_s10, [#allocation5]  }
 0x1d7   :  { %270 = dma.done.wait [#allocation5], 128  }
 0x1d8   :  { %271 = vsyncadd [#allocation5], 4294967168 }
 0x1d9   :  { %176 = vsyncpa [#allocation4], 1 }
 0x1da   :  { %177 = vsyncpa [#allocation7], 1 }
 0x1db   :  { %178 = vsyncpa [#allocation5], 1 }

</bundles_post_ra>
